<compile_context>
chip_gen: v5e
topology: v5e:2x2
jax: 0.10.0
libtpu: 0.0.40
codegen_flags: <defaults>
</compile_context>

<pallas_src>
import math
from functools import partial
from typing import NamedTuple, Optional

import numpy as np

import jax
import jax.numpy as jnp
from jax import lax
from jax.experimental import pallas as pl
from jax.experimental.pallas import tpu as pltpu

_INV_SQRT2 = 1.0 / math.sqrt(2.0)
_SQRT_2_OVER_PI = math.sqrt(2.0 / math.pi)


def _round_up(a, m):
    return ((a + m - 1) // m) * m


def _gelu_f32(g, approximate):
    if approximate:
        # tanh-approx GELU: the transcendental goes to the otherwise-idle EUP slot.
        return 0.5 * g * (1.0 + jnp.tanh(_SQRT_2_OVER_PI * (g + 0.044715 * g * g * g)))
    # exact (erf) GELU: matches torch.nn.functional.gelu default.
    return 0.5 * g * (1.0 + lax.erf(g * _INV_SQRT2))


# ---------------------------------------------------------------------------
# Kernels
# ---------------------------------------------------------------------------
def _geglu_kernel(x_ref, w_ref, b_ref, o_ref, *, approximate):
    """Full-K variant: one fused [value|gate] MXU dot per grid step."""
    # x_ref: (tm, dim_in), w_ref: (dim_in, 2*tn), b_ref: (1, 2*tn) f32, o_ref: (tm, tn)
    tn = o_ref.shape[-1]
    proj = jnp.dot(x_ref[...], w_ref[...],
                   preferred_element_type=jnp.float32) + b_ref[...]
    h = proj[:, :tn]      # lane slice at a 128-multiple boundary: free
    g = proj[:, tn:]
    o_ref[...] = (h * _gelu_f32(g, approximate)).astype(o_ref.dtype)


def _geglu_kernel_ktiled(x_ref, w_ref, b_ref, o_ref, acc_ref, *, approximate):
    """K-tiled variant (large dim_in): f32 accumulator, GELU epilogue on last K step."""
    k = pl.program_id(2)

    @pl.when(k == 0)
    def _init():
        acc_ref[...] = jnp.zeros_like(acc_ref)

    acc_ref[...] += jnp.dot(x_ref[...], w_ref[...],
                            preferred_element_type=jnp.float32)

    @pl.when(k == pl.num_programs(2) - 1)
    def _epilogue():
        tn = o_ref.shape[-1]
        proj = acc_ref[...] + b_ref[...]
        h = proj[:, :tn]
        g = proj[:, tn:]
        o_ref[...] = (h * _gelu_f32(g, approximate)).astype(o_ref.dtype)


# ---------------------------------------------------------------------------
# Planning (generation-aware VMEM budgeting)
# ---------------------------------------------------------------------------
class _Plan(NamedTuple):
    dim_in: int
    dim_out: int
    k_pad: int
    n_pad: int
    tm: int
    tn: int
    tk: int
    weight_bufs: int      # 1 -> single-buffer weight/bias blocks (full-K only)
    vmem_limit: int


def _vmem_budget_bytes():
    try:
        cap = int(pltpu.get_tpu_info().vmem_capacity_bytes)
    except Exception:
        cap = 64 * 1024 * 1024   # conservative (v7x-sized) fallback
    # leave ~25% headroom for Mosaic internal scratch / semaphores
    return (cap * 3) // 4


def _plan_geglu(dim_in, dim_out, x_itemsize, w_itemsize, budget, *,
                tm=256, tn=None, max_tk=None):
    o_itemsize = 4   # conservative: output may stay f32 even for bf16 compute
    dim_out_pad = _round_up(dim_out, 128)
    if tn is None:
        tn0 = min(512, dim_out_pad)
        # Prefer >=2 N tiles (when they split evenly): on a 2-TC chip (v7x) the
        # weight-resident N axis is then sharded across cores, so each core
        # fetches disjoint weight tiles instead of both re-reading all of them.
        if tn0 == dim_out_pad and dim_out_pad >= 256 and dim_out_pad % 256 == 0:
            tn0 = dim_out_pad // 2
    else:
        tn0 = max(128, min(_round_up(tn, 128), dim_out_pad))
    if max_tk is None:
        max_tk = dim_in

    def footprint(tm_, tn_, tk_, wbufs, ktiled):
        f = 2 * tm_ * tk_ * x_itemsize                             # x (double-buffered)
        f += wbufs * (tk_ * 2 * tn_ * w_itemsize + 2 * tn_ * 4)    # fused weights + bias
        f += 2 * tm_ * tn_ * o_itemsize                            # output (double-buffered)
        if ktiled:
            f += tm_ * 2 * tn_ * 4                                 # f32 accumulator scratch
        return f

    tn_cands = list(range(tn0, 127, -128))
    tm_cands = [t for t in (tm, 128, 64, 32) if t <= tm] or [tm]

    # Preference: big tn (fewer redundant x reads) > big tm > double-buffered
    # full-K weights > single-buffered full-K weights > K-tiling.
    for tn_ in tn_cands:
        n_pad = _round_up(dim_out, tn_)
        for tm_ in tm_cands:
            if max_tk >= dim_in:
                if footprint(tm_, tn_, dim_in, 2, False) <= budget:
                    return _Plan(dim_in, dim_out, dim_in, n_pad, tm_, tn_, dim_in, 2, budget)
                # Weight block is reused across the whole inner M sweep, so a second
                # weight buffer only hides one DMA per N tile -> drop it (key for
                # fitting v7x's 64 MiB VMEM at large dim_in).
                if footprint(tm_, tn_, dim_in, 1, False) <= budget:
                    return _Plan(dim_in, dim_out, dim_in, n_pad, tm_, tn_, dim_in, 1, budget)
            if dim_in > 128:
                tk_ = (min(max_tk, dim_in) // 128) * 128
                while tk_ >= 128:
                    if tk_ < dim_in and footprint(tm_, tn_, tk_, 2, True) <= budget:
                        return _Plan(dim_in, dim_out, _round_up(dim_in, tk_), n_pad,
                                     tm_, tn_, tk_, 2, budget)
                    tk_ -= 128
    # Nothing met the budget cleanly: fall back to the smallest tiles.
    n_pad = _round_up(dim_out, 128)
    if dim_in > 128:
        return _Plan(dim_in, dim_out, _round_up(dim_in, 128), n_pad,
                     tm_cands[-1], 128, 128, 2, budget)
    return _Plan(dim_in, dim_out, dim_in, n_pad, tm_cands[-1], 128, dim_in, 1, budget)


# ---------------------------------------------------------------------------
# One-time weight preparation (hoisted out of the per-call path)
# ---------------------------------------------------------------------------
def _prepare_geglu_weights(w, b, plan, compute_dtype):
    """Split / transpose / pad / interleave nn.Linear weights ONCE (at init).

    w: (2*dim_out, dim_in) PyTorch nn.Linear layout; b: (2*dim_out,)
    For every N tile j, columns [2*tn*j : 2*tn*j+tn] of w_fused are the value
    tile and the next tn columns are the gate tile.
    """
    dim_in, dim_out = plan.dim_in, plan.dim_out
    wv = w[:dim_out, :].T                      # (dim_in, dim_out) value half
    wg = w[dim_out:, :].T                      # (dim_in, dim_out) gate half
    bv = b[:dim_out].astype(jnp.float32)
    bg = b[dim_out:].astype(jnp.float32)

    pk = plan.k_pad - dim_in
    pn = plan.n_pad - dim_out
    if pk or pn:
        wv = jnp.pad(wv, ((0, pk), (0, pn)))
        wg = jnp.pad(wg, ((0, pk), (0, pn)))
        bv = jnp.pad(bv, (0, pn))
        bg = jnp.pad(bg, (0, pn))

    nt = plan.n_pad // plan.tn
    w_fused = jnp.stack([wv.reshape(plan.k_pad, nt, plan.tn),
                         wg.reshape(plan.k_pad, nt, plan.tn)], axis=2)
    w_fused = w_fused.reshape(plan.k_pad, 2 * plan.n_pad)
    b_fused = jnp.stack([bv.reshape(nt, plan.tn), bg.reshape(nt, plan.tn)], axis=1)
    b_fused = b_fused.reshape(1, 2 * plan.n_pad)

    if compute_dtype is not None:
        w_fused = w_fused.astype(compute_dtype)   # native bf16 MXU path
    return w_fused, b_fused


# ---------------------------------------------------------------------------
# Forward
# ---------------------------------------------------------------------------
def _geglu_forward(x, w_fused, b_fused, *, plan, approximate, compute_dtype):
    *lead, dim_in = x.shape
    if dim_in != plan.dim_in:
        raise ValueError(f"expected trailing dim {plan.dim_in}, got {dim_in}")
    out_dtype = x.dtype
    if compute_dtype is not None:
        x = x.astype(compute_dtype)      # avoid silent f32 promotion inside the dot

    M = int(math.prod(lead)) if lead else 1
    # dtype-aware sublane rounding: f32 -> 8 rows, bf16 -> 16, int8/fp8 -> 32
    row_mult = {4: 8, 2: 16, 1: 32}.get(np.dtype(x.dtype).itemsize, 8)
    tm_cap = min(plan.tm, _round_up(M, row_mult))
    m_tiles = -(-M // tm_cap)
    tm = min(tm_cap, _round_up(-(-M // m_tiles), row_mult))   # balance tiles, less padding
    m_pad = tm * m_tiles

    x2 = x.reshape(M, dim_in)
    if m_pad != M or plan.k_pad != dim_in:
        x2 = jnp.pad(x2, ((0, m_pad - M), (0, plan.k_pad - dim_in)))

    tn, tk = plan.tn, plan.tk
    nt = plan.n_pad // tn
    kt = plan.k_pad // tk

    w_kwargs = {}
    if plan.weight_bufs == 1:
        # Weight/bias blocks are reused across the whole inner M sweep:
        # single-buffer them to halve the largest VMEM consumer.
        w_kwargs["pipeline_mode"] = pl.Buffered(1)

    if kt == 1:
        # Grid: N outermost, M innermost -> weight tile DMA'd once per N tile.
        grid = (nt, m_tiles)
        in_specs = [
            pl.BlockSpec((tm, tk), lambda j, i: (i, 0)),
            pl.BlockSpec((tk, 2 * tn), lambda j, i: (0, j), **w_kwargs),
            pl.BlockSpec((1, 2 * tn), lambda j, i: (0, j), **w_kwargs),
        ]
        out_spec = pl.BlockSpec((tm, tn), lambda j, i: (i, j))
        kernel = partial(_geglu_kernel, approximate=approximate)
        scratch = ()
        dims = ("parallel", "parallel")
    else:
        # Large dim_in: K-tiled with an f32 VMEM accumulator.
        grid = (nt, m_tiles, kt)
        in_specs = [
            pl.BlockSpec((tm, tk), lambda j, i, k: (i, k)),
            pl.BlockSpec((tk, 2 * tn), lambda j, i, k: (k, j)),
            pl.BlockSpec((1, 2 * tn), lambda j, i, k: (0, j)),
        ]
        out_spec = pl.BlockSpec((tm, tn), lambda j, i, k: (i, j))
        kernel = partial(_geglu_kernel_ktiled, approximate=approximate)
        scratch = (pltpu.VMEM((tm, 2 * tn), jnp.float32),)
        dims = ("parallel", "parallel", "arbitrary")

    out = pl.pallas_call(
        kernel,
        out_shape=jax.ShapeDtypeStruct((m_pad, plan.n_pad), out_dtype),
        grid_spec=pltpu.PrefetchScalarGridSpec(
            num_scalar_prefetch=0,
            grid=grid,
            in_specs=in_specs,
            out_specs=out_spec,
            scratch_shapes=scratch,
        ),
        compiler_params=pltpu.CompilerParams(
            dimension_semantics=dims,
            vmem_limit_bytes=plan.vmem_limit,
        ),
    )(x2, w_fused, b_fused)

    out = out[:M, :plan.dim_out]
    return out.reshape(*lead, plan.dim_out)


def make_geglu(w, b, *, approximate=False, compute_dtype=None,
               tm=256, tn=None, max_tk=None, vmem_budget_bytes=None):
    """Build a GEGLU forward fn; weight prep runs ONCE here (store the result as params).

    w: (2*dim_out, dim_in) PyTorch nn.Linear weight, b: (2*dim_out,)
    Returns fn(x: (..., dim_in)) -> (..., dim_out).
    """
    w = jnp.asarray(w)
    b = jnp.asarray(b)
    two_dim_out, dim_in = w.shape
    dim_out = two_dim_out // 2
    cdt = np.dtype(compute_dtype) if compute_dtype is not None else None
    budget = vmem_budget_bytes if vmem_budget_bytes is not None else _vmem_budget_bytes()

    x_isz = cdt.itemsize if cdt is not None else np.dtype(w.dtype).itemsize
    plan = _plan_geglu(dim_in, dim_out, x_isz, x_isz, budget,
                       tm=tm, tn=tn, max_tk=max_tk)

    w_fused, b_fused = _prepare_geglu_weights(w, b, plan, cdt)
    fwd = jax.jit(partial(_geglu_forward, plan=plan, approximate=approximate,
                          compute_dtype=cdt))

    def apply(x):
        return fwd(x, w_fused, b_fused)

    apply.plan = plan
    return apply


# ---------------------------------------------------------------------------
# Pure-JAX reference
# ---------------------------------------------------------------------------
def geglu_ref(x, w, b):
    dim_out = w.shape[0] // 2
    proj = jnp.dot(x.astype(jnp.float32), w.astype(jnp.float32).T,
                   precision=lax.Precision.HIGHEST) + b.astype(jnp.float32)
    h, g = proj[..., :dim_out], proj[..., dim_out:]
    return (h * jax.nn.gelu(g, approximate=False)).astype(x.dtype)


if __name__ == "__main__":
    key = jax.random.PRNGKey(0)

    def make_linear_params(k, dim_in, dim_out):
        kw, kb = jax.random.split(k)
        bound = 1.0 / math.sqrt(dim_in)
        w = jax.random.uniform(kw, (2 * dim_out, dim_in),
                               minval=-bound, maxval=bound, dtype=jnp.float32)
        b = jax.random.uniform(kb, (2 * dim_out,),
                               minval=-bound, maxval=bound, dtype=jnp.float32)
        return w, b

    # Case 1: small, nicely shaped (f32).
    batch, seq, dim_in, dim_out = 2, 16, 64, 128
    key, kx, kp = jax.random.split(key, 3)
    x = jax.random.normal(kx, (batch, seq, dim_in), dtype=jnp.float32)
    w, b = make_linear_params(kp, dim_in, dim_out)
    geglu_fn = make_geglu(w, b)                       # weight prep hoisted: runs once
    out = jax.block_until_ready(geglu_fn(x))
    out = jax.block_until_ready(geglu_fn(x))          # second call: no re-prep
    ref = geglu_ref(x, w, b)
    assert out.shape == (batch, seq, dim_out)
    assert jnp.allclose(out, ref, atol=1e-5, rtol=1e-5)

    # Case 2: ragged shapes -> exercises M/N padding and a 2-tile N axis.
    batch, seq, dim_in, dim_out = 3, 7, 64, 192
    key, kx, kp = jax.random.split(key, 3)
    x = jax.random.normal(kx, (batch, seq, dim_in), dtype=jnp.float32)
    w, b = make_linear_params(kp, dim_in, dim_out)
    geglu_fn = make_geglu(w, b)
    out = jax.block_until_ready(geglu_fn(x))
    ref = geglu_ref(x, w, b)
    assert out.shape == (batch, seq, dim_out)
    assert jnp.allclose(out, ref, atol=1e-5, rtol=1e-5)

    # Case 3: force the K-tiled (f32-accumulator) path.
    batch, seq, dim_in, dim_out = 2, 16, 256, 256
    key, kx, kp = jax.random.split(key, 3)
    x = jax.random.normal(kx, (batch, seq, dim_in), dtype=jnp.float32)
    w, b = make_linear_params(kp, dim_in, dim_out)
    geglu_fn = make_geglu(w, b, max_tk=128)
    assert geglu_fn.plan.tk == 128 and geglu_fn.plan.k_pad == 256
    out = jax.block_until_ready(geglu_fn(x))
    ref = geglu_ref(x, w, b)
    assert out.shape == (batch, seq, dim_out)
    assert jnp.allclose(out, ref, atol=1e-4, rtol=1e-4)

    # Case 4: bf16 compute path (native MXU dtype) with f32 inputs/params.
    batch, seq, dim_in, dim_out = 2, 12, 64, 128
    key, kx, kp = jax.random.split(key, 3)
    x = jax.random.normal(kx, (batch, seq, dim_in), dtype=jnp.float32)
    w, b = make_linear_params(kp, dim_in, dim_out)
    geglu_fn = make_geglu(w, b, compute_dtype=jnp.bfloat16)
    out = jax.block_until_ready(geglu_fn(x))
    ref = geglu_ref(x.astype(jnp.bfloat16).astype(jnp.float32),
                    w.astype(jnp.bfloat16).astype(jnp.float32), b)
    assert out.shape == (batch, seq, dim_out)
    assert jnp.allclose(out, ref, atol=2e-3, rtol=2e-2)

    print("KERNEL_OK")
</pallas_src>

<mosaic_0001>
module attributes {stable_mosaic.version = 11 : i64} {
  func.func @_geglu_kernel(%arg0: i32, %arg1: i32, %arg2: memref<32x64xf32, #tpu.memory_space<vmem>>, %arg3: memref<64x256xf32, #tpu.memory_space<vmem>>, %arg4: memref<1x256xf32, #tpu.memory_space<vmem>>, %arg5: memref<32x128xf32, #tpu.memory_space<vmem>>) attributes {dimension_semantics = [#tpu.dimension_semantics<parallel>, #tpu.dimension_semantics<parallel>], iteration_bounds = array<i64: 1, 1>, scalar_prefetch = 0 : i64, scratch_operands = 0 : i64, tpu.core_type = #tpu.core_type<tc>, window_params = [{transform_indices = @transform_0, window_bounds = array<i64: 32, 64>}, {transform_indices = @transform_1, window_bounds = array<i64: 64, 256>}, {transform_indices = @transform_2, window_bounds = array<i64: 1, 256>}, {transform_indices = @transform_3, window_bounds = array<i64: 32, 128>}]} {
    %c0 = arith.constant 0 : index
    %c0_0 = arith.constant 0 : index
    %0 = vector.load %arg2[%c0, %c0_0] : memref<32x64xf32, #tpu.memory_space<vmem>>, vector<32x64xf32>
    %c0_1 = arith.constant 0 : index
    %c0_2 = arith.constant 0 : index
    %1 = vector.load %arg3[%c0_1, %c0_2] : memref<64x256xf32, #tpu.memory_space<vmem>>, vector<64x256xf32>
    %cst = arith.constant dense<0.000000e+00> : vector<32x256xf32>
    %2 = tpu.matmul %0, %1, %cst {dimension_numbers = #tpu.dot_dimension_numbers<[1], [0], [0], [1], [0, 0, 1, 1], [], []>} : vector<32x64xf32>, vector<64x256xf32>, vector<32x256xf32> -> vector<32x256xf32>
    %c0_3 = arith.constant 0 : index
    %c0_4 = arith.constant 0 : index
    %3 = vector.load %arg4[%c0_3, %c0_4] : memref<1x256xf32, #tpu.memory_space<vmem>>, vector<1x256xf32>
    %4 = vector.broadcast %3 : vector<1x256xf32> to vector<32x256xf32>
    %5 = arith.addf %2, %4 : vector<32x256xf32>
    %6 = vector.extract_strided_slice %5 {offsets = [0, 0], sizes = [32, 128], strides = [1, 1]} : vector<32x256xf32> to vector<32x128xf32>
    %7 = vector.extract_strided_slice %5 {offsets = [0, 128], sizes = [32, 128], strides = [1, 1]} : vector<32x256xf32> to vector<32x128xf32>
    %cst_5 = arith.constant 5.000000e-01 : f32
    %8 = vector.broadcast %cst_5 : f32 to vector<32x128xf32>
    %9 = arith.mulf %8, %7 : vector<32x128xf32>
    %cst_6 = arith.constant 0.707106769 : f32
    %10 = vector.broadcast %cst_6 : f32 to vector<32x128xf32>
    %11 = arith.mulf %7, %10 : vector<32x128xf32>
    %12 = math.erf %11 : vector<32x128xf32>
    %cst_7 = arith.constant 1.000000e+00 : f32
    %13 = vector.broadcast %cst_7 : f32 to vector<32x128xf32>
    %14 = arith.addf %13, %12 : vector<32x128xf32>
    %15 = arith.mulf %9, %14 : vector<32x128xf32>
    %16 = arith.mulf %6, %15 : vector<32x128xf32>
    %c0_8 = arith.constant 0 : index
    %c0_9 = arith.constant 0 : index
    %17 = vector.load %arg5[%c0_8, %c0_9] : memref<32x128xf32, #tpu.memory_space<vmem>>, vector<32x128xf32>
    tpu.vector_store %arg5[%c0_8, %c0_9], %16 {strides = array<i32>} : memref<32x128xf32, #tpu.memory_space<vmem>>, vector<32x128xf32>,
    return
  }
  func.func @transform_0(%arg0: i32, %arg1: i32) -> (i32, i32) {
    %c0_i32 = arith.constant 0 : i32
    %c0_i32_0 = arith.constant 0 : i32
    return %arg1, %c0_i32 : i32, i32
  }
  func.func @transform_1(%arg0: i32, %arg1: i32) -> (i32, i32) {
    %c0_i32 = arith.constant 0 : i32
    %c0_i32_0 = arith.constant 0 : i32
    return %c0_i32, %arg0 : i32, i32
  }
  func.func @transform_2(%arg0: i32, %arg1: i32) -> (i32, i32) {
    %c0_i32 = arith.constant 0 : i32
    %c0_i32_0 = arith.constant 0 : i32
    return %c0_i32, %arg0 : i32, i32
  }
  func.func @transform_3(%arg0: i32, %arg1: i32) -> (i32, i32) {
    %c0_i32 = arith.constant 0 : i32
    return %arg1, %arg0 : i32, i32
  }
}

</mosaic_0001>

<bundles_post_ra>
// kernel: _geglu_forward.1
= control target key start
LH: loop header
LB: loop body
LE: loop exit
PB: predicated region body
PF: predicated region fallthrough
CT: control target
= control target key end

     0   :  { %8 = vsyncpa [#allocation3], 0  ;;  %s637_s0 = inlined_call_operand.hbm [shape: f32[32,64], index: 0, kind: input, shape index: {}]   ;;  %s638_s1 = inlined_call_operand.hbm [shape: f32[64,256], index: 1, kind: input, shape index: {}]   ;;  %s639_s2 = inlined_call_operand.vmem [shape: f32[1,256], index: 2, kind: input, shape index: {}]   ;;  %s640_s3 = inlined_call_operand.hbm [shape: f32[32,128], index: 3, kind: output, shape index: {}]  }
   0x1   :  { %9 = vsyncpa [#allocation6], 0 }
   0x2   :  { %10 = vsyncpa [#allocation4], 0  ;;  %s15_s14 = sshll.u32 %s637_s0, 4  ;;  %s469_s15 = smov [#allocation2]   ;;  %s16_s14 = int_to_ptr.hbm [resolvable:$true] %s15_s14 }
   0x3   :  { %s17_s16 = sshll.u32 %s469_s15, 4  ;;  %s28_s19 = sshll.u32 %s638_s1, 4  ;;  %s18_s16 = int_to_ptr.vmem [resolvable:$true] %s17_s16  ;;  %s29_s19 = int_to_ptr.hbm [resolvable:$true] %s28_s19 }
   0x4   :  { %s470_s20 = smov 128   ;;  %s471_s21 = smov 8  }
   0x5   :  { %23 = dma.hbm_to_vmem [thread:$0]  %s16_s14, 512, %s18_s16, [#allocation3], %s470_s20, %s470_s20, %s471_s21  }
   0x6   :  { %s472_s22 = smov [#allocation5]   ;;  %s473_s24 = smov 256  }
   0x7   :  { %s30_s23 = sshll.u32 %s472_s22, 4  ;;  %s474_s0 = smov 16   ;;  %s31_s23 = int_to_ptr.vmem [resolvable:$true] %s30_s23 }
   0x8   :  { %36 = dma.hbm_to_vmem [thread:$0]  %s29_s19, 2048, %s31_s23, [#allocation6], %s473_s24, %s473_s24, %s474_s0  }
   0x9   :  { %463 = dma.done.wait [#allocation3], 512  }
   0xa   :  { %464 = vsyncadd [#allocation3], 4294966784 }
   0xb   :  { %465 = dma.done.wait [#allocation6], 2048  }
   0xc   :  { %466 = vsyncadd [#allocation6], 4294965248  ;;  %v66_v0 = vld [vmem:[#allocation5 + $0x78] sm:$0xff]  ;;  %v64_v1 = vld [vmem:[#allocation5 + $0x68] sm:$0xff]  ;;  %vm73_vm0 = vcmask 523264   ;;  %s334_s29 = sshll.u32 %s640_s3, 4  ;;  %s335_s29 = int_to_ptr.hbm [resolvable:$true] %s334_s29 }
   0xd   :  { %123 = vmatpush.msra.mxu1 %v66_v0  ;;  %368 = vmatpush.msra.mxu3 %v66_v0  ;;  %v62_v2 = vld [vmem:[#allocation5 + $0x58] sm:$0xff]  ;;  %v60_v3 = vld [vmem:[#allocation5 + $0x48] sm:$0xff]  ;;  %v65_v4 = vld [vmem:[#allocation5 + $0x70] sm:$0xff] }
   0xe   :  { %v63_v5 = vld [vmem:[#allocation5 + $0x60] sm:$0xff]  ;;  %v58_v6 = vld [vmem:[#allocation5 + $0x38] sm:$0xff]  ;;  %94 = vmatpush.msra.mxu0 %v65_v4  ;;  %360 = vmatpush.msra.mxu2 %v65_v4  ;;  %v61_v7 = vld [vmem:[#allocation5 + $0x50] sm:$0xff] }
   0xf   :  { %124 = vmatpush.msra.mxu1 %v64_v1  ;;  %369 = vmatpush.msra.mxu3 %v64_v1  ;;  %v56_v8 = vld [vmem:[#allocation5 + $0x28] sm:$0xff]  ;;  %v59_v9 = vld [vmem:[#allocation5 + $0x40] sm:$0xff]  ;;  %v54_v10 = vld [vmem:[#allocation5 + $0x18] sm:$0xff] }
  0x10   :  { %95 = vmatpush.msra.mxu0 %v63_v5  ;;  %361 = vmatpush.msra.mxu2 %v63_v5  ;;  %v57_v11 = vld [vmem:[#allocation5 + $0x30] sm:$0xff]  ;;  %v52_v12 = vld [vmem:[#allocation5 + $0x8] sm:$0xff]  ;;  %v47_v13 = vld [vmem:[#allocation2] sm:$0xff] }
  0x11   :  { %125 = vmatpush.msra.mxu1 %v62_v2  ;;  %370 = vmatpush.msra.mxu3 %v62_v2  ;;  %v49_v14 = vld [vmem:[#allocation2 + $0x10] sm:$0xff]  ;;  %v55_v15 = vld [vmem:[#allocation5 + $0x20] sm:$0xff]  ;;  %v48_v18 = vld [vmem:[#allocation2 + $0x8] sm:$0xff] }
  0x12   :  { %96 = vmatpush.msra.mxu0 %v61_v7  ;;  %362 = vmatpush.msra.mxu2 %v61_v7  ;;  %v53_v16 = vld [vmem:[#allocation5 + $0x10] sm:$0xff]  ;;  %v51_v17 = vld [vmem:[#allocation5] sm:$0xff]  ;;  %v50_v19 = vld [vmem:[#allocation2 + $0x18] sm:$0xff] }
  0x13   :  { %126 = vmatpush.msra.mxu1 %v60_v3  ;;  %371 = vmatpush.msra.mxu3 %v60_v3  ;;  %v516_v20 = vld [vmem:[%s639_s2] sm:$0x3]  ;;  %s475_s2 = smov [#allocation7]  }
  0x14   :  { %97 = vmatpush.msra.mxu0 %v59_v9  ;;  %363 = vmatpush.msra.mxu2 %v59_v9  ;;  %v70_v21 = vperm.slane %v516_v20, 1  ;;  %s332_s26 = sshll.u32 %s475_s2, 4  ;;  %s333_s26 = int_to_ptr.vmem [resolvable:$true] %s332_s26 }
  0x15   :  { %127 = vmatpush.msra.mxu1 %v58_v6  ;;  %372 = vmatpush.msra.mxu3 %v58_v6 }
  0x16   :  { %98 = vmatpush.msra.mxu0 %v57_v11  ;;  %364 = vmatpush.msra.mxu2 %v57_v11 }
  0x17   :  { %128 = vmatpush.msra.mxu1 %v56_v8  ;;  %373 = vmatpush.msra.mxu3 %v56_v8 }
  0x18   :  { %99 = vmatpush.msra.mxu0 %v55_v15  ;;  %365 = vmatpush.msra.mxu2 %v55_v15 }
  0x19   :  { %129 = vmatpush.msra.mxu1 %v54_v10  ;;  %374 = vmatpush.msra.mxu3 %v54_v10 }
  0x1a   :  { %100 = vmatpush.msra.mxu0 %v53_v16  ;;  %366 = vmatpush.msra.mxu2 %v53_v16 }
  0x1b   :  { %130 = vmatpush.msra.mxu1 %v52_v12  ;;  %375 = vmatpush.msra.mxu3 %v52_v12 }
  0x1c   :  { %352 = vmatmul.msk.f32.vlgmr.msra.gmra.mxu1 %vm73_vm0, %v47_v13  ;;  %354 = vmatmul.msk.f32.vlgmr.msra.gmra.mxu3 %vm73_vm0, %v49_v14 }
  0x1d   :  { %101 = vmatpush.msra.mxu0 %v51_v17  ;;  %367 = vmatpush.msra.mxu2 %v51_v17 }
  0x1e   :  { %348 = vmatmul.msk.f32.vlgmr.msra.gmra.mxu0 %vm73_vm0, %v47_v13  ;;  %350 = vmatmul.msk.f32.vlgmr.msra.gmra.mxu2 %vm73_vm0, %v49_v14 }
  0x24   :  { %353 = vmatmul.msk.f32.gmra.mxu1 %vm73_vm0, %v48_v18  ;;  %355 = vmatmul.msk.f32.gmra.mxu3 %vm73_vm0, %v50_v19 }
  0x26   :  { %349 = vmatmul.msk.f32.gmra.mxu0 %vm73_vm0, %v48_v18  ;;  %351 = vmatmul.msk.f32.gmra.mxu2 %vm73_vm0, %v50_v19 }
  0x99   :  { %v132_v22 = vpop.f32.mrf.mxu1 }
  0x9a   :  { %v519_v23 = vadd.f32 %v132_v22, %v70_v21 }
  0x9c   :  { %v522_v24 = vmul.f32 0.70710677, %v519_v23 }
  0x9e   :  { %v152_v25 = vmul.f32 %v522_v24, %v522_v24 }
  0x9f   :  { %v138_v26 = vpop.f32.mrf.mxu3 }
  0xa0   :  { %v526_v27 = vmin.f32 %v152_v25, 16.0  ;;  %v528_v28 = vadd.f32 %v138_v26, %v70_v21 }
  0xa1   :  { %v135_v29 = vpop.f32.mrf.mxu1 }
  0xa2   :  { %v154_v30 = vmul.f32 2.1237322e-06, %v526_v27  ;;  %v165_v31 = vmul.f32 3.8918573e-05, %v526_v27  ;;  %v532_v32 = vadd.f32 %v135_v29, %v70_v21  ;;  %v535_v33 = vmul.f32 0.70710677, %v528_v28 }
  0xa4   :  { %v155_v34 = vadd.f32 0.00028619796, %v154_v30  ;;  %v166_v35 = vadd.f32 0.001143296, %v165_v31  ;;  %v232_v36 = vmul.f32 %v535_v33, %v535_v33  ;;  %v540_v37 = vmul.f32 0.70710677, %v532_v32 }
  0xa6   :  { %v156_v38 = vmul.f32 %v155_v34, %v526_v27  ;;  %v167_v39 = vmul.f32 %v166_v35, %v526_v27  ;;  %v544_v40 = vmin.f32 %v232_v36, 16.0  ;;  %v192_v41 = vmul.f32 %v540_v37, %v540_v37 }
  0xa7   :  { %v141_v42 = vpop.f32.mrf.mxu3 }
  0xa8   :  { %v157_v43 = vadd.f32 0.0036580483, %v156_v38  ;;  %v168_v44 = vadd.f32 0.014752088, %v167_v39  ;;  %v548_v45 = vadd.f32 %v141_v42, %v70_v21  ;;  %v234_v46 = vmul.f32 2.1237322e-06, %v544_v40 }
  0xa9   :  { %v245_v47 = vmul.f32 3.8918573e-05, %v544_v40  ;;  %v552_v48 = vmin.f32 %v192_v41, 16.0 }
  0xaa   :  { %v169_v49 = vmul.f32 %v168_v44, %v526_v27  ;;  %v556_v50 = vmul.f32 0.70710677, %v548_v45  ;;  %v235_v51 = vadd.f32 0.00028619796, %v234_v46  ;;  %v158_v54 = vmul.f32 %v157_v43, %v526_v27 }
  0xab   :  { %v246_v52 = vadd.f32 0.001143296, %v245_v47  ;;  %v194_v53 = vmul.f32 2.1237322e-06, %v552_v48  ;;  %v205_v56 = vmul.f32 3.8918573e-05, %v552_v48 }
  0xac   :  { %v170_v55 = vadd.f32 0.112945676, %v169_v49  ;;  %v272_v57 = vmul.f32 %v556_v50, %v556_v50  ;;  %v236_v58 = vmul.f32 %v235_v51, %v544_v40  ;;  %v159_v3 = vadd.f32 0.05243302, %v158_v54 }
  0xad   :  { %v247_v59 = vmul.f32 %v246_v52, %v544_v40  ;;  %v195_v60 = vadd.f32 0.00028619796, %v194_v53  ;;  %v206_v62 = vadd.f32 0.001143296, %v205_v56 }
  0xae   :  { %v171_v61 = vmul.f32 %v170_v55, %v526_v27  ;;  %v566_v63 = vmin.f32 %v272_v57, 16.0  ;;  %v237_v0 = vadd.f32 0.0036580483, %v236_v58  ;;  %v160_v15 = vmul.f32 %v159_v3, %v526_v27 }
  0xaf   :  { %v248_v1 = vadd.f32 0.014752088, %v247_v59  ;;  %v196_v2 = vmul.f32 %v195_v60, %v552_v48  ;;  %v207_v5 = vmul.f32 %v206_v62, %v552_v48 }
  0xb0   :  { %v172_v4 = vadd.f32 0.4994258, %v171_v61  ;;  %v274_v6 = vmul.f32 2.1237322e-06, %v566_v63  ;;  %v285_v8 = vmul.f32 3.8918573e-05, %v566_v63  ;;  %v238_v10 = vmul.f32 %v237_v0, %v544_v40 }
  0xb1   :  { %v249_v7 = vmul.f32 %v248_v1, %v544_v40  ;;  %v208_v11 = vadd.f32 0.014752088, %v207_v5  ;;  %v197_v13 = vadd.f32 0.0036580483, %v196_v2  ;;  %v161_v29 = vadd.f32 0.18741608, %v160_v15  ;;  %v103_v15 = vpop.f32.mrf.mxu0 }
  0xb2   :  { %v173_v9 = vmul.f32 %v172_v4, %v526_v27  ;;  %v286_v14 = vadd.f32 0.001143296, %v285_v8  ;;  %v275_v18 = vadd.f32 0.00028619796, %v274_v6  ;;  %v239_v21 = vadd.f32 0.05243302, %v238_v10 }
  0xb3   :  { %v250_v12 = vadd.f32 0.112945676, %v249_v7  ;;  %v209_v17 = vmul.f32 %v208_v11, %v552_v48  ;;  %v198_v26 = vmul.f32 %v197_v13, %v552_v48  ;;  %v162_v43 = vmul.f32 %v161_v29, %v526_v27 }
  0xb4   :  { %v174_v16 = vadd.f32 1.0, %v173_v9  ;;  %v287_v22 = vmul.f32 %v286_v14, %v566_v63  ;;  %v276_v31 = vmul.f32 %v275_v18, %v566_v63  ;;  %v240_v35 = vmul.f32 %v239_v21, %v544_v40 }
  0xb5   :  { %v251_v19 = vmul.f32 %v250_v12, %v544_v40  ;;  %v210_v30 = vadd.f32 0.112945676, %v209_v17  ;;  %v199_v41 = vadd.f32 0.05243302, %v198_v26  ;;  %v163_v56 = vadd.f32 1.1283791, %v162_v43 }
  0xb6   :  { %383 = vrcp.f32 %v174_v16  ;;  %v288_v38 = vadd.f32 0.014752088, %v287_v22  ;;  %v277_v46 = vadd.f32 0.0036580483, %v276_v31  ;;  %v241_v51 = vadd.f32 0.18741608, %v240_v35 }
  0xb7   :  { %v252_v25 = vadd.f32 0.4994258, %v251_v19  ;;  %v211_v36 = vmul.f32 %v210_v30, %v552_v48  ;;  %v200_v53 = vmul.f32 %v199_v41, %v552_v48  ;;  %v184_v57 = vand.u32 2147483647, %v174_v16 }
  0xb8   :  { %v289_v47 = vmul.f32 %v288_v38, %v566_v63  ;;  %v186_v58 = vand.u32 2147483648, %v174_v16  ;;  %v278_v59 = vmul.f32 %v277_v46, %v566_v63  ;;  %v242_v62 = vmul.f32 %v241_v51, %v544_v40 }
  0xb9   :  { %v253_v34 = vmul.f32 %v252_v25, %v544_v40  ;;  %v212_v44 = vadd.f32 0.4994258, %v211_v36  ;;  %vm180_vm2 = vweird.f32 %v174_v16  ;;  %v201_v2 = vadd.f32 0.18741608, %v200_v53 }
  0xba   :  { %v290_v55 = vadd.f32 0.112945676, %v289_v47  ;;  %v164_v3 = vmul.f32 %v163_v56, %v522_v24  ;;  %v187_v4 = vor.u32 1.1754944e-38, %v186_v58  ;;  %vm185_vm4 = vcmp.eq.f32.partialorder %v184_v57, 8.507059e+37 }
  0xbb   :  { %v584_v39 = vadd.f32 1.0, %v253_v34  ;;  %v213_v54 = vmul.f32 %v212_v44, %v552_v48  ;;  %v279_v7 = vadd.f32 0.05243302, %v278_v59  ;;  %v243_v10 = vadd.f32 1.1283791, %v242_v62 }
  0xbc   :  { %v384_v42 = vpop.eup %383  ;;  %v291_v61 = vmul.f32 %v290_v55, %v566_v63  ;;  %v600_v40 = vperm.slane %v516_v20, 0  ;;  %v202_v14 = vmul.f32 %v201_v2, %v552_v48  ;;  %v144_v19 = vmul.f32 0.5, %v519_v23 }
  0xbd   :  { %v176_v49 = vmul.f32 %v384_v42, %v174_v16  ;;  %385 = vrcp.f32 %v584_v39  ;;  %vm181_vm1 = vweird.f32 %v384_v42  ;;  %v592_v60 = vadd.f32 1.0, %v213_v54 }
  0xbe   :  { %vm182_vm3 = vmor %vm180_vm2, %vm181_vm1  ;;  %v292_v8 = vadd.f32 0.4994258, %v291_v61  ;;  %v266_v13 = vand.u32 2147483648, %v584_v39  ;;  %v264_v17 = vand.u32 2147483647, %v584_v39  ;;  %v280_v21 = vmul.f32 %v279_v7, %v566_v63 }
  0xbf   :  { %v177_v52 = vsub.f32 1.0, %v176_v49  ;;  %387 = vrcp.f32 %v592_v60  ;;  %vm260_vm6 = vweird.f32 %v584_v39  ;;  %v104_v26 = vadd.f32 %v103_v15, %v600_v40 }
  0xc0   :  { %v293_v24 = vmul.f32 %v292_v8, %v566_v63  ;;  %v244_v29 = vmul.f32 %v243_v10, %v535_v33  ;;  %v267_v30 = vor.u32 1.1754944e-38, %v266_v13  ;;  %v203_v31 = vadd.f32 1.1283791, %v202_v14  ;;  %v109_v33 = vpop.f32.mrf.mxu2 }
  0xc1   :  { %v178_v27 = vmul.f32 %v384_v42, %v177_v52  ;;  %vm265_vm8 = vcmp.eq.f32.partialorder %v264_v17, 8.507059e+37  ;;  %v224_v38 = vand.u32 2147483647, %v592_v60  ;;  %v281_v41 = vadd.f32 0.18741608, %v280_v21 }
  0xc2   :  { %v608_v22 = vadd.f32 1.0, %v293_v24  ;;  %v146_v46 = vmul.f32 0.5, %v528_v28  ;;  %vm220_vm10 = vweird.f32 %v592_v60  ;;  %v204_v53 = vmul.f32 %v203_v31, %v540_v37 }
  0xc3   :  { %v386_v0 = vpop.eup %385  ;;  %v179_v1 = vadd.f32 %v384_v42, %v178_v27  ;;  %v282_v55 = vmul.f32 %v281_v41, %v566_v63  ;;  %v110_v56 = vadd.f32 %v109_v33, %v600_v40  ;;  %vm225_vm12 = vcmp.eq.f32.partialorder %v224_v38, 8.507059e+37 }
  0xc4   :  { %v256_v5 = vmul.f32 %v386_v0, %v584_v39  ;;  %vm261_vm5 = vweird.f32 %v386_v0  ;;  %389 = vrcp.f32 %v608_v22  ;;  %v226_v39 = vand.u32 2147483648, %v592_v60 }
  0xc5   :  { %v183_v6 = vsel %vm182_vm3, %v384_v42, %v179_v1  ;;  %v388_v18 = vpop.eup %387  ;;  %vm262_vm7 = vmor %vm260_vm6, %vm261_vm5  ;;  %v283_v62 = vadd.f32 1.1283791, %v282_v55  ;;  %v306_v37 = vand.u32 2147483648, %v608_v22  ;;  %v106_v1 = vpop.f32.mrf.mxu0  ;;  %vm300_vm14 = vweird.f32 %v608_v22 }
  0xc6   :  { %v188_v9 = vsel %vm185_vm4, %v187_v4, %v183_v6  ;;  %v257_v11 = vsub.f32 1.0, %v256_v5  ;;  %v216_v48 = vmul.f32 %v388_v18, %v592_v60  ;;  %vm221_vm9 = vweird.f32 %v388_v18 }
  0xc7   :  { %v189_v12 = vmul.f32 %v188_v9, %v164_v3  ;;  %vm222_vm11 = vmor %vm220_vm10, %vm221_vm9  ;;  %v227_v54 = vor.u32 1.1754944e-38, %v226_v39  ;;  %v145_v4 = vmul.f32 0.5, %v532_v32  ;;  %v107_v6 = vadd.f32 %v106_v1, %v600_v40 }
  0xc8   :  { %v258_v16 = vmul.f32 %v386_v0, %v257_v11  ;;  %v217_v34 = vsub.f32 1.0, %v216_v48  ;;  %v307_v8 = vor.u32 1.1754944e-38, %v306_v37  ;;  %v284_v9 = vmul.f32 %v283_v62, %v556_v50  ;;  %v112_v24 = vpop.f32.mrf.mxu2 }
  0xc9   :  { %v356_v20 = vclamps-f32 %v189_v12, 1.0  ;;  %v147_v15 = vmul.f32 0.5, %v548_v45 }
  0xca   :  { %v259_v25 = vadd.f32 %v386_v0, %v258_v16  ;;  %v218_v43 = vmul.f32 %v388_v18, %v217_v34  ;;  %v390_v52 = vpop.eup %389  ;;  %v113_v16 = vadd.f32 %v112_v24, %v600_v40 }
  0xcb   :  { %v312_v35 = vadd.f32 1.0, %v356_v20  ;;  %v296_v58 = vmul.f32 %v390_v52, %v608_v22  ;;  %vm301_vm13 = vweird.f32 %v390_v52 }
  0xcc   :  { %v263_v23 = vsel %vm262_vm7, %v386_v0, %v259_v25  ;;  %v219_v47 = vadd.f32 %v388_v18, %v218_v43  ;;  %v304_v0 = vand.u32 2147483647, %v608_v22  ;;  %vm302_vm15 = vmor %vm300_vm14, %vm301_vm13 }
  0xcd   :  { %v268_v36 = vsel %vm265_vm8, %v267_v30, %v263_v23  ;;  %v316_v44 = vmul.f32 %v312_v35, %v144_v19  ;;  %v297_v60 = vsub.f32 1.0, %v296_v58 }
  0xce   :  { %v269_v42 = vmul.f32 %v268_v36, %v244_v29  ;;  %v223_v57 = vsel %vm222_vm11, %v388_v18, %v219_v47  ;;  %vm305_vm0 = vcmp.eq.f32.partialorder %v304_v0, 8.507059e+37 }
  0xcf   :  { %v320_v49 = vmul.f32 %v316_v44, %v104_v26  ;;  %v228_v59 = vsel %vm225_vm12, %v227_v54, %v223_v57  ;;  %v298_v2 = vmul.f32 %v390_v52, %v297_v60 }
  0xd0   :  { %v358_v51 = vclamps-f32 %v269_v42, 1.0  ;;  %v229_v27 = vmul.f32 %v228_v59, %v204_v53 }
  0xd1   :  { %324 = vst [vmem:[#allocation7] sm:$0xff] %v320_v49  ;;  %v299_v5 = vadd.f32 %v390_v52, %v298_v2 }
  0xd2   :  { %v314_v28 = vadd.f32 1.0, %v358_v51  ;;  %v357_v3 = vclamps-f32 %v229_v27, 1.0 }
  0xd3   :  { %v303_v10 = vsel %vm302_vm15, %v390_v52, %v299_v5 }
  0xd4   :  { %v318_v61 = vmul.f32 %v314_v28, %v146_v46  ;;  %v313_v7 = vadd.f32 1.0, %v357_v3  ;;  %v308_v12 = vsel %vm305_vm0, %v307_v8, %v303_v10 }
  0xd5   :  { %v309_v13 = vmul.f32 %v308_v12, %v284_v9 }
  0xd6   :  { %v322_v63 = vmul.f32 %v318_v61, %v110_v56  ;;  %v317_v11 = vmul.f32 %v313_v7, %v145_v4 }
  0xd7   :  { %v359_v32 = vclamps-f32 %v309_v13, 1.0 }
  0xd8   :  { %326 = vst [vmem:[#allocation7 + $0x10] sm:$0xff] %v322_v63  ;;  %v321_v14 = vmul.f32 %v317_v11, %v107_v6 }
  0xd9   :  { %v315_v17 = vadd.f32 1.0, %v359_v32 }
  0xda   :  { %325 = vst [vmem:[#allocation7 + $0x8] sm:$0xff] %v321_v14 }
  0xdb   :  { %v319_v50 = vmul.f32 %v315_v17, %v147_v15 }
  0xdd   :  { %v323_v18 = vmul.f32 %v319_v50, %v113_v16 }
  0xdf   :  { %327 = vst [vmem:[#allocation7 + $0x18] sm:$0xff] %v323_v18 }
  0xe0   :  { %340 = dma.vmem_to_hbm [thread:$0]  %s333_s26, 512, %s335_s29, [#allocation4], %s470_s20, %s470_s20, %s471_s21  }
  0xe1   :  { %467 = dma.done.wait [#allocation4], 512  }
  0xe2   :  { %468 = vsyncadd [#allocation4], 4294966784 }
  0xe3   :  { %345 = vsyncpa [#allocation3], 1 }
  0xe4   :  { %346 = vsyncpa [#allocation6], 1 }
  0xe5   :  { %347 = vsyncpa [#allocation4], 1 }

</bundles_post_ra>
